<compile_context>
chip_gen: v7x
topology: tpu7x:2x2x1
jax: 0.10.0
libtpu: 0.0.40
codegen_flags: <defaults>
</compile_context>

<pallas_src>
import jax
import jax.numpy as jnp
from jax.experimental import pallas as pl
from jax.experimental.pallas import tpu as pltpu


def _round_up(x, m):
    return ((x + m - 1) // m) * m


# --------------------- kernel A: layer 1 (+ W2 projection) ---------------------

def _layer1_kernel_foldw1(adj_ref, x_ref, w1_ref, b1_ref, w2_ref, t_ref, acc_ref):
    """t = ((adj @ x) @ W1 + b1) @ W2; row-tiled, k-reduction over adj columns.

    adj_ref : [tm, tk]          bf16 (streamed)
    x_ref   : [tk, F]           bf16
    w1_ref  : [F, ME_pad]       bf16 (manifolds packed along lanes)
    b1_ref  : [1, ME_pad]       f32
    w2_ref  : [ME_pad, ME_pad]  bf16 (block-diagonal over manifolds)
    t_ref   : [tm, ME_pad]      bf16 out
    acc_ref : [tm, F]           f32  scratch (adj@x accumulator)
    """
    k = pl.program_id(1)

    @pl.when(k == 0)
    def _():
        acc_ref[...] = jnp.zeros_like(acc_ref)

    acc_ref[...] += jnp.dot(adj_ref[...], x_ref[...],
                            preferred_element_type=jnp.float32)

    @pl.when(k == pl.num_programs(1) - 1)
    def _():
        h1 = jnp.dot(acc_ref[...].astype(jnp.bfloat16), w1_ref[...],
                     preferred_element_type=jnp.float32) + b1_ref[...]
        t = jnp.dot(h1.astype(jnp.bfloat16), w2_ref[...],
                    preferred_element_type=jnp.float32)
        t_ref[...] = t.astype(t_ref.dtype)


def _layer1_kernel_prefolded(adj_ref, xw1_ref, b1_ref, w2_ref, t_ref, acc_ref):
    """Same as above but x@W1 precomputed in the wrapper (used when ME_pad < F)."""
    k = pl.program_id(1)

    @pl.when(k == 0)
    def _():
        acc_ref[...] = jnp.zeros_like(acc_ref)

    acc_ref[...] += jnp.dot(adj_ref[...], xw1_ref[...],
                            preferred_element_type=jnp.float32)

    @pl.when(k == pl.num_programs(1) - 1)
    def _():
        h1 = acc_ref[...] + b1_ref[...]
        t = jnp.dot(h1.astype(jnp.bfloat16), w2_ref[...],
                    preferred_element_type=jnp.float32)
        t_ref[...] = t.astype(t_ref.dtype)


# --------------------- kernel B: layer 2 aggregation ---------------------------

def _layer2_kernel(adj_ref, t_ref, b2_ref, out_ref, acc_ref):
    """out = adj @ t + b2; row-tiled, k-reduction over adj columns."""
    k = pl.program_id(1)

    @pl.when(k == 0)
    def _():
        acc_ref[...] = jnp.zeros_like(acc_ref)

    acc_ref[...] += jnp.dot(adj_ref[...], t_ref[...],
                            preferred_element_type=jnp.float32)

    @pl.when(k == pl.num_programs(1) - 1)
    def _():
        out_ref[...] = (acc_ref[...] + b2_ref[...]).astype(out_ref.dtype)


# --------------------- wrapper -------------------------------------------------

def gcn_list_forward(node_feature, adj, curvatures, params):
    """Pallas forward for GCNList. `curvatures` kept for API parity (unused)."""
    del curvatures  # see TODO(synk) above
    w1, b1, w2, b2 = params                      # [M,F,E], [M,1,E], [M,E,E], [M,1,E]
    M, F, E = w1.shape
    N = adj.shape[0]
    ME = M * E
    ME_pad = _round_up(ME, 128)                  # lane-dense packed width

    # ---- tile / padding choices ------------------------------------------------
    TILE = 256
    if N <= TILE:
        n_pad = _round_up(N, 16)                 # bf16 sublane pack
        tm = tk = n_pad                          # single tile -> grid (1, 1)
    else:
        n_pad = _round_up(N, TILE)
        tm = tk = TILE
    gm, gk = n_pad // tm, n_pad // tk

    # ---- pack per-manifold params into lane-dense, 128-padded slabs -------------
    w1_cat = jnp.transpose(w1, (1, 0, 2)).reshape(F, ME)        # col index = m*E + e
    w1_pad = jnp.pad(w1_cat, ((0, 0), (0, ME_pad - ME)))
    b1_pad = jnp.pad(b1.reshape(1, ME), ((0, 0), (0, ME_pad - ME))).astype(jnp.float32)
    b2_pad = jnp.pad(b2.reshape(1, ME), ((0, 0), (0, ME_pad - ME))).astype(jnp.float32)
    w2_bd = jnp.zeros((ME_pad, ME_pad), dtype=w2.dtype)         # block-diagonal layer-2 W
    for m in range(M):
        w2_bd = w2_bd.at[m * E:(m + 1) * E, m * E:(m + 1) * E].set(w2[m])
    # TODO(synk): once M*E grows past one MXU tile, replace the block-diagonal W2
    # matmul with a batched per-manifold contraction to avoid wasted MXU FLOPs.

    adj_pad = jnp.pad(adj, ((0, n_pad - N), (0, n_pad - N))).astype(jnp.bfloat16)
    x_pad = jnp.pad(node_feature, ((0, n_pad - N), (0, 0)))
    w2_bf = w2_bd.astype(jnp.bfloat16)

    # ---- layer-1 association choice (trace time) --------------------------------
    fold_w1_inside = F <= ME_pad                 # inner width of N^2 matmul = min(F, ME_pad)
    if fold_w1_inside:
        rhs = x_pad.astype(jnp.bfloat16)         # [n_pad, F]
        rhs_w = F
        kernel_a = _layer1_kernel_foldw1
        extra_ops = (w1_pad.astype(jnp.bfloat16),)
        extra_specs = (pl.BlockSpec((F, ME_pad), lambda i, k: (0, 0)),)
    else:
        rhs = (x_pad @ w1_pad).astype(jnp.bfloat16)   # [n_pad, ME_pad], tiny vs N^2 work
        rhs_w = ME_pad
        kernel_a = _layer1_kernel_prefolded
        extra_ops = ()
        extra_specs = ()

    # ---- advisory cost estimates -------------------------------------------------
    flops_a = (2 * n_pad * n_pad * rhs_w
               + (2 * n_pad * F * ME_pad if fold_w1_inside else 0)
               + 2 * n_pad * ME_pad * ME_pad)
    bytes_a = (n_pad * n_pad * 2 + gm * n_pad * rhs_w * 2
               + ME_pad * ME_pad * 2 + F * ME_pad * 2
               + 2 * ME_pad * 4 + n_pad * ME_pad * 2)
    flops_b = 2 * n_pad * n_pad * ME_pad
    bytes_b = (n_pad * n_pad * 2 + gm * n_pad * ME_pad * 2
               + ME_pad * 4 + n_pad * ME_pad * 4)

    # ---- call A: t = ((adj @ x) @ W1 + b1) @ W2  (bf16 intermediate) ------------
    t = pl.pallas_call(
        kernel_a,
        out_shape=jax.ShapeDtypeStruct((n_pad, ME_pad), jnp.bfloat16),
        grid_spec=pltpu.PrefetchScalarGridSpec(
            num_scalar_prefetch=0,
            grid=(gm, gk),
            in_specs=[
                pl.BlockSpec((tm, tk), lambda i, k: (i, k)),          # adj (streamed)
                pl.BlockSpec((tk, rhs_w), lambda i, k: (k, 0)),       # x  (or x@W1)
                *extra_specs,                                         # W1 (if folded inside)
                pl.BlockSpec((1, ME_pad), lambda i, k: (0, 0)),       # b1
                pl.BlockSpec((ME_pad, ME_pad), lambda i, k: (0, 0)),  # W2 block-diag
            ],
            out_specs=pl.BlockSpec((tm, ME_pad), lambda i, k: (i, 0)),
            scratch_shapes=[pltpu.VMEM((tm, rhs_w), jnp.float32)],
        ),
        compiler_params=pltpu.CompilerParams(
            dimension_semantics=("parallel", "arbitrary")),
        cost_estimate=pl.CostEstimate(
            flops=flops_a, transcendentals=0, bytes_accessed=bytes_a),
    )(adj_pad, rhs, *extra_ops, b1_pad, w2_bf)

    # ---- call B: out = adj @ t + b2 ----------------------------------------------
    out2d = pl.pallas_call(
        _layer2_kernel,
        out_shape=jax.ShapeDtypeStruct((n_pad, ME_pad), jnp.float32),
        grid_spec=pltpu.PrefetchScalarGridSpec(
            num_scalar_prefetch=0,
            grid=(gm, gk),
            in_specs=[
                pl.BlockSpec((tm, tk), lambda i, k: (i, k)),          # adj (streamed)
                pl.BlockSpec((tk, ME_pad), lambda i, k: (k, 0)),      # t (bf16)
                pl.BlockSpec((1, ME_pad), lambda i, k: (0, 0)),       # b2
            ],
            out_specs=pl.BlockSpec((tm, ME_pad), lambda i, k: (i, 0)),
            scratch_shapes=[pltpu.VMEM((tm, ME_pad), jnp.float32)],
        ),
        compiler_params=pltpu.CompilerParams(
            dimension_semantics=("parallel", "arbitrary")),
        cost_estimate=pl.CostEstimate(
            flops=flops_b, transcendentals=0, bytes_accessed=bytes_b),
    )(adj_pad, t, b2_pad)

    # strip padding; [N, M*E] -> [M, N, E]  (matches torch.stack(..., dim=0))
    out = out2d[:N, :ME].reshape(N, M, E)
    return jnp.transpose(out, (1, 0, 2))


def _reference(node_feature, adj, params):
    """Pure-JAX f32 reference for correctness check (per-manifold loop)."""
    w1, b1, w2, b2 = params
    outs = []
    for m in range(w1.shape[0]):
        h = adj @ (node_feature @ w1[m]) + b1[m]
        h = adj @ (h @ w2[m]) + b2[m]
        outs.append(h)
    return jnp.stack(outs, axis=0)


if __name__ == "__main__":
    # Small shapes implied by the forward: N nodes, feature_dim F,
    # embedding_dim E, num_manifold M.
    M, N, F, E = 2, 16, 8, 32

    key = jax.random.PRNGKey(0)
    k_x, k_a, k_w1, k_b1, k_w2, k_b2, k_c = jax.random.split(key, 7)

    node_feature = jax.random.normal(k_x, (N, F), dtype=jnp.float32)
    adj_raw = jax.random.uniform(k_a, (N, N), dtype=jnp.float32)
    adj = (adj_raw + adj_raw.T) * 0.5 + jnp.eye(N, dtype=jnp.float32)  # symmetric + self loops
    adj = adj / jnp.sum(adj, axis=-1, keepdims=True)                   # row-normalized
    curvatures = jax.random.uniform(k_c, (M,), dtype=jnp.float32) + 0.5

    # Deterministic (glorot-ish) parameter init, stacked over the M manifolds.
    w1 = jax.random.normal(k_w1, (M, F, E), dtype=jnp.float32) * (1.0 / jnp.sqrt(F))
    b1 = jax.random.normal(k_b1, (M, 1, E), dtype=jnp.float32) * 0.01
    w2 = jax.random.normal(k_w2, (M, E, E), dtype=jnp.float32) * (1.0 / jnp.sqrt(E))
    b2 = jax.random.normal(k_b2, (M, 1, E), dtype=jnp.float32) * 0.01
    params = (w1, b1, w2, b2)

    out = gcn_list_forward(node_feature, adj, curvatures, params)
    out = jax.block_until_ready(out)

    ref = _reference(node_feature, adj, params)
    assert out.shape == (M, N, E), out.shape
    # bf16 MXU operands + reassociated layer-1 => looser tolerance vs the f32 reference.
    assert jnp.allclose(out, ref, atol=5e-2, rtol=5e-2), (
        "mismatch vs reference, max abs diff = %f" % float(jnp.max(jnp.abs(out - ref))))

    print("KERNEL_OK")
</pallas_src>

<mosaic_0001>
module attributes {stable_mosaic.version = 11 : i64} {
  func.func @_layer1_kernel_foldw1(%arg0: i32, %arg1: i32, %arg2: memref<16x16xbf16, #tpu.memory_space<vmem>>, %arg3: memref<16x8xbf16, #tpu.memory_space<vmem>>, %arg4: memref<8x128xbf16, #tpu.memory_space<vmem>>, %arg5: memref<1x128xf32, #tpu.memory_space<vmem>>, %arg6: memref<128x128xbf16, #tpu.memory_space<vmem>>, %arg7: memref<16x128xbf16, #tpu.memory_space<vmem>>, %arg8: memref<16x8xf32, #tpu.memory_space<vmem>>) attributes {dimension_semantics = [#tpu.dimension_semantics<parallel>, #tpu.dimension_semantics<arbitrary>], iteration_bounds = array<i64: 1, 1>, scalar_prefetch = 0 : i64, scratch_operands = 1 : i64, tpu.core_type = #tpu.core_type<tc>, window_params = [{transform_indices = @transform_0, window_bounds = array<i64: 16, 16>}, {transform_indices = @transform_1, window_bounds = array<i64: 16, 8>}, {pipeline_mode = #tpu.pipeline_mode<synchronous>, transform_indices = @transform_2, window_bounds = array<i64: 8, 128>}, {pipeline_mode = #tpu.pipeline_mode<synchronous>, transform_indices = @transform_3, window_bounds = array<i64: 1, 128>}, {pipeline_mode = #tpu.pipeline_mode<synchronous>, transform_indices = @transform_4, window_bounds = array<i64: 128, 128>}, {transform_indices = @transform_5, window_bounds = array<i64: 16, 128>}]} {
    %c0_i32 = arith.constant 0 : i32
    %0 = arith.cmpi eq, %arg1, %c0_i32 : i32
    %1 = arith.extui %0 : i1 to i32
    %c0_i32_0 = arith.constant 0 : i32
    %2 = arith.cmpi ne, %1, %c0_i32_0 : i32
    scf.if %2 {
      %cst_10 = arith.constant 0.000000e+00 : f32
      %12 = vector.broadcast %cst_10 : f32 to vector<16x8xf32>
      %c0_11 = arith.constant 0 : index
      %c0_12 = arith.constant 0 : index
      %13 = vector.load %arg8[%c0_11, %c0_12] : memref<16x8xf32, #tpu.memory_space<vmem>>, vector<16x8xf32>
      tpu.vector_store %arg8[%c0_11, %c0_12], %12 {strides = array<i32>} : memref<16x8xf32, #tpu.memory_space<vmem>>, vector<16x8xf32>,
    } else {
    }
    %c0 = arith.constant 0 : index
    %c0_1 = arith.constant 0 : index
    %3 = vector.load %arg8[%c0, %c0_1] : memref<16x8xf32, #tpu.memory_space<vmem>>, vector<16x8xf32>
    %c0_2 = arith.constant 0 : index
    %c0_3 = arith.constant 0 : index
    %4 = vector.load %arg2[%c0_2, %c0_3] : memref<16x16xbf16, #tpu.memory_space<vmem>>, vector<16x16xbf16>
    %c0_4 = arith.constant 0 : index
    %c0_5 = arith.constant 0 : index
    %5 = vector.load %arg3[%c0_4, %c0_5] : memref<16x8xbf16, #tpu.memory_space<vmem>>, vector<16x8xbf16>
    %cst = arith.constant dense<0.000000e+00> : vector<16x8xf32>
    %6 = tpu.matmul %4, %5, %cst {dimension_numbers = #tpu.dot_dimension_numbers<[1], [0], [0], [1], [0, 0, 1, 1], [], []>} : vector<16x16xbf16>, vector<16x8xbf16>, vector<16x8xf32> -> vector<16x8xf32>
    %7 = arith.addf %3, %6 : vector<16x8xf32>
    %c0_6 = arith.constant 0 : index
    %c0_7 = arith.constant 0 : index
    %8 = vector.load %arg8[%c0_6, %c0_7] : memref<16x8xf32, #tpu.memory_space<vmem>>, vector<16x8xf32>
    tpu.vector_store %arg8[%c0_6, %c0_7], %7 {strides = array<i32>} : memref<16x8xf32, #tpu.memory_space<vmem>>, vector<16x8xf32>,
    %c0_i32_8 = arith.constant 0 : i32
    %9 = arith.cmpi eq, %arg1, %c0_i32_8 : i32
    %10 = arith.extui %9 : i1 to i32
    %c0_i32_9 = arith.constant 0 : i32
    %11 = arith.cmpi ne, %10, %c0_i32_9 : i32
    scf.if %11 {
      %c0_10 = arith.constant 0 : index
      %c0_11 = arith.constant 0 : index
      %12 = vector.load %arg8[%c0_10, %c0_11] : memref<16x8xf32, #tpu.memory_space<vmem>>, vector<16x8xf32>
      %13 = arith.truncf %12 : vector<16x8xf32> to vector<16x8xbf16>
      %c0_12 = arith.constant 0 : index
      %c0_13 = arith.constant 0 : index
      %14 = vector.load %arg4[%c0_12, %c0_13] : memref<8x128xbf16, #tpu.memory_space<vmem>>, vector<8x128xbf16>
      %cst_14 = arith.constant dense<0.000000e+00> : vector<16x128xf32>
      %15 = tpu.matmul %13, %14, %cst_14 {dimension_numbers = #tpu.dot_dimension_numbers<[1], [0], [0], [1], [0, 0, 1, 1], [], []>} : vector<16x8xbf16>, vector<8x128xbf16>, vector<16x128xf32> -> vector<16x128xf32>
      %c0_15 = arith.constant 0 : index
      %c0_16 = arith.constant 0 : index
      %16 = vector.load %arg5[%c0_15, %c0_16] : memref<1x128xf32, #tpu.memory_space<vmem>>, vector<1x128xf32>
      %17 = vector.broadcast %16 : vector<1x128xf32> to vector<16x128xf32>
      %18 = arith.addf %15, %17 : vector<16x128xf32>
      %19 = arith.truncf %18 : vector<16x128xf32> to vector<16x128xbf16>
      %c0_17 = arith.constant 0 : index
      %c0_18 = arith.constant 0 : index
      %20 = vector.load %arg6[%c0_17, %c0_18] : memref<128x128xbf16, #tpu.memory_space<vmem>>, vector<128x128xbf16>
      %cst_19 = arith.constant dense<0.000000e+00> : vector<16x128xf32>
      %21 = tpu.matmul %19, %20, %cst_19 {dimension_numbers = #tpu.dot_dimension_numbers<[1], [0], [0], [1], [0, 0, 1, 1], [], []>} : vector<16x128xbf16>, vector<128x128xbf16>, vector<16x128xf32> -> vector<16x128xf32>
      %22 = arith.truncf %21 : vector<16x128xf32> to vector<16x128xbf16>
      %c0_20 = arith.constant 0 : index
      %c0_21 = arith.constant 0 : index
      %23 = vector.load %arg7[%c0_20, %c0_21] : memref<16x128xbf16, #tpu.memory_space<vmem>>, vector<16x128xbf16>
      tpu.vector_store %arg7[%c0_20, %c0_21], %22 {strides = array<i32>} : memref<16x128xbf16, #tpu.memory_space<vmem>>, vector<16x128xbf16>,
    } else {
    }
    return
  }
  func.func @transform_0(%arg0: i32, %arg1: i32) -> (i32, i32) {
    %c0_i32 = arith.constant 0 : i32
    return %arg0, %arg1 : i32, i32
  }
  func.func @transform_1(%arg0: i32, %arg1: i32) -> (i32, i32) {
    %c0_i32 = arith.constant 0 : i32
    %c0_i32_0 = arith.constant 0 : i32
    return %arg1, %c0_i32 : i32, i32
  }
  func.func @transform_2(%arg0: i32, %arg1: i32) -> (i32, i32) {
    %c0_i32 = arith.constant 0 : i32
    %c0_i32_0 = arith.constant 0 : i32
    %c0_i32_1 = arith.constant 0 : i32
    return %c0_i32, %c0_i32_0 : i32, i32
  }
  func.func @transform_3(%arg0: i32, %arg1: i32) -> (i32, i32) {
    %c0_i32 = arith.constant 0 : i32
    %c0_i32_0 = arith.constant 0 : i32
    %c0_i32_1 = arith.constant 0 : i32
    return %c0_i32, %c0_i32_0 : i32, i32
  }
  func.func @transform_4(%arg0: i32, %arg1: i32) -> (i32, i32) {
    %c0_i32 = arith.constant 0 : i32
    %c0_i32_0 = arith.constant 0 : i32
    %c0_i32_1 = arith.constant 0 : i32
    return %c0_i32, %c0_i32_0 : i32, i32
  }
  func.func @transform_5(%arg0: i32, %arg1: i32) -> (i32, i32) {
    %c0_i32 = arith.constant 0 : i32
    %c0_i32_0 = arith.constant 0 : i32
    return %arg0, %c0_i32 : i32, i32
  }
}

</mosaic_0001>

<bundles_post_ra>
// kernel: tpu_custom_call.1
= control target key start
LH: loop header
LB: loop body
LE: loop exit
PB: predicated region body
PF: predicated region fallthrough
CT: control target
= control target key end

     0   :  { %10 = vsyncpa [#allocation4], 0  ;;  %s519_s0 = inlined_call_operand.vmem [shape: bf16[16,16], index: 0, kind: input, shape index: {}]   ;;  %s520_s1 = inlined_call_operand.vmem [shape: bf16[16,8], index: 1, kind: input, shape index: {}]   ;;  %s521_s2 = inlined_call_operand.vmem [shape: bf16[8,128], index: 2, kind: input, shape index: {}]   ;;  %s522_s3 = inlined_call_operand.vmem [shape: f32[1,128], index: 3, kind: input, shape index: {}]   ;;  %s523_s4 = inlined_call_operand.hbm [shape: bf16[128,128], index: 4, kind: input, shape index: {}]   ;;  %s524_s5 = inlined_call_operand.hbm [shape: bf16[16,128], index: 5, kind: output, shape index: {}]  }
   0x1   :  { %11 = vsyncpa [#allocation5], 0  ;;  %s436_s18 = smov [#allocation3]   ;;  %s388_s22 = scalar_lea.hbm %s523_s4, 1024 }
   0x2   :  { %s25_s19 = sshll.u32 %s436_s18, 4  ;;  %p389_p0 = scmp.ne.s32.totalorder %s523_s4, %s388_s22  ;;  %s26_s19 = int_to_ptr.vmem [resolvable:$true] %s25_s19 }
   0x3   :  { %p392_p1 = scmp.lt.u32.totalorder %s388_s22, %s523_s4 }
   0x5   :  { %p394_p2 = pnand %p392_p1, %p389_p0 }
   0x7   :  { %397 = shalt.err (!%p394_p2)
}
   0x8   :  { %s398_s27 = scalar_lea.vmem %s26_s19, 1024  ;;  %p403_p4 = scmp.lt.s32.totalorder %s26_s19, %s26_s19 }
   0x9   :  { %p399_p3 = scmp.ne.s32.totalorder %s26_s19, %s398_s27  ;;  %p404_p5 = scmp.lt.s32.totalorder %s398_s27, %s398_s27 }
   0xb   :  { %p405_p6 = por %p404_p5, %p403_p4 }
   0xd   :  { %p406_p7 = pnand %p405_p6, %p399_p3 }
   0xf   :  { %409 = shalt.err (!%p406_p7)
}
  0x10   :  { %s437_s28 = smov 64   ;;  %s438_s29 = smov 4  }
  0x11   :  { %31 = dma.hbm_to_vmem [thread:$0]  %s523_s4, 1024, %s26_s19, [#allocation4], %s437_s28, %s437_s28, %s438_s29  }
  0x12   :  { %432 = dma.done.wait [#allocation4], 1024  }
  0x13   :  { %433 = vsyncadd [#allocation4], 4294966272  ;;  %vm40_vm0 = vcmask 64512   ;;  %v439_v0 = vmov 0.0   ;;  %vm440_vm1 = vmmov 0   ;;  %v378_v1 = vld [vmem:[%s520_s1] sm:$0xff]  }
  0x14   :  { %340 = vmatprep.subr.bf16.mxu1 %v439_v0  ;;  %342 = vmatprep.mubr.msk.bf16.mxu1 %vm440_vm1, %v439_v0  ;;  %41 = vst.msk [vmem:[#allocation2] sm:$0xff] %vm40_vm0, %v439_v0  ;;  %42 = vst.msk [vmem:[#allocation2 + $0x8] sm:$0xff] %vm40_vm0, %v439_v0  ;;  %v379_v2 = vld [vmem:[%s519_s0] sm:$0xff]   ;;  %vm60_vm2 = vcmask 130048   ;;  %vm127_vm3 = vcmask 1043456   ;;  %v380_v5 = vld [vmem:[#allocation3] sm:$0xff]  }
  0x15   :  { %352 = vmatprep.subr.bf16.mxu0 %v439_v0  ;;  %368 = vmatprep.mubr.msk.bf16.mxu0 %vm440_vm1, %v439_v0  ;;  %v116_v3 = vld [vmem:[%s521_s2] sm:$0xf]  ;;  %v381_v6 = vld [vmem:[#allocation3 + $0x8] sm:$0xff]   ;;  %v383_v8 = vld [vmem:[#allocation3 + $0x18] sm:$0xff]   ;;  %s441_s2 = smov [#allocation6]  }
  0x16   :  { %341 = vmatpush3.bf16.msra.mxu1 %v378_v1  ;;  %v129_v4 = vsel %vm127_vm3, %v116_v3, 0  ;;  %353 = vmatpush3.bf16.msra.mxu0 %v380_v5  ;;  %v382_v7 = vld [vmem:[#allocation3 + $0x10] sm:$0xff]   ;;  %v384_v9 = vld [vmem:[#allocation3 + $0x20] sm:$0xff]   ;;  %v385_v10 = vld [vmem:[#allocation3 + $0x28] sm:$0xff]   ;;  %s293_s12 = sshll.u32 %s441_s2, 4  ;;  %s294_s12 = int_to_ptr.vmem [resolvable:$true] %s293_s12 }
  0x17   :  { %346 = vmatprep.subr.bf16.mxu1 %v439_v0  ;;  %354 = vmatprep.subr.bf16.mxu0 %v439_v0  ;;  %v386_v22 = vld [vmem:[#allocation3 + $0x30] sm:$0xff]   ;;  %v387_v23 = vld [vmem:[#allocation3 + $0x38] sm:$0xff]   ;;  %s410_s13 = scalar_lea.vmem %s294_s12, 128  ;;  %p415_p9 = scmp.lt.s32.totalorder %s294_s12, %s294_s12 }
  0x18   :  { %v308_v24 = vld [vmem:[%s522_s3] ss:$0 sm:$0xff]  ;;  %p411_p8 = scmp.ne.s32.totalorder %s294_s12, %s410_s13  ;;  %p416_p10 = scmp.lt.s32.totalorder %s410_s13, %s410_s13 }
  0x19   :  { %343 = vmatmul.mubr.msk.bf16.vlgmr.msra.gmra.mrb[0].mxu1 %vm60_vm2, %v379_v2 }
  0x1a   :  { %348 = vmatprep.mubr.msk.bf16.mxu1 %vm440_vm1, %v439_v0  ;;  %347 = vmatpush3.bf16.msra.mxu1 %v129_v4  ;;  %p417_p11 = por %p416_p10, %p415_p9 }
  0x1b   :  { %355 = vmatpush3.bf16.msra.mxu0 %v381_v6  ;;  %v43_v11 = vld [vmem:[#allocation2] sm:$0xff]  ;;  %v44_v13 = vld [vmem:[#allocation2 + $0x8] sm:$0xff] }
  0x1c   :  { %356 = vmatprep.subr.bf16.mxu0 %v439_v0  ;;  %p418_p12 = pnand %p417_p11, %p411_p8 }
  0x1f   :  { %357 = vmatpush3.bf16.msra.mxu0 %v382_v7 }
  0x20   :  { %358 = vmatprep.subr.bf16.mxu0 %v439_v0 }
  0x23   :  { %359 = vmatpush3.bf16.msra.mxu0 %v383_v8 }
  0x24   :  { %360 = vmatprep.subr.bf16.mxu0 %v439_v0 }
  0x27   :  { %361 = vmatpush3.bf16.msra.mxu0 %v384_v9 }
  0x28   :  { %362 = vmatprep.subr.bf16.mxu0 %v439_v0 }
  0x2b   :  { %363 = vmatpush3.bf16.msra.mxu0 %v385_v10 }
  0x2c   :  { %364 = vmatprep.subr.bf16.mxu0 %v439_v0 }
  0x2f   :  { %365 = vmatpush3.bf16.msra.mxu0 %v386_v22 }
  0x30   :  { %366 = vmatprep.subr.bf16.mxu0 %v439_v0 }
  0x33   :  { %367 = vmatpush3.bf16.msra.mxu0 %v387_v23 }
  0xec   :  { %v98_v12 = vpop.f32.mrb[0].mxu1 }
  0xed   :  { %v105_v14 = vadd.f32 %v98_v12, %v43_v11  ;;  %v344_v15 = vpop.f32.mrb[1].mxu1 }
  0xee   :  { %v101_v16 = vpop.f32.mrb[2].mxu1 }
  0xef   :  { %108 = vst.msk [vmem:[#allocation2] sm:$0xff] %vm40_vm0, %v105_v14  ;;  %v106_v17 = vadd.f32 %v101_v16, %v44_v13  ;;  %v345_v18 = vpop.f32.mrb[3].mxu1 }
  0xf1   :  { %109 = vst.msk [vmem:[#allocation2 + $0x8] sm:$0xff] %vm40_vm0, %v106_v17 }
  0xf6   :  { %v113_v19 = vld [vmem:[#allocation2] sm:$0xff] }
  0xf8   :  { %v114_v20 = vld [vmem:[#allocation2 + $0x8] sm:$0xff] }
  0xf9   :  { %v115_v21 = vpack.c.bf16 %v114_v20, %v113_v19 }
  0xfb   :  { %349 = vmatmul.mubr.msk.bf16.vlgmr.msra.gmra.mrb[4].mxu1 %vm40_vm0, %v115_v21 }
 0x1ce   :  { %v165_v25 = vpop.f32.mrb[4].mxu1 }
 0x1cf   :  { %v350_v26 = vpop.f32.mrb[5].mxu1  ;;  %v166_v28 = vadd.f32 %v308_v24, %v165_v25 }
 0x1d0   :  { %v168_v27 = vpop.f32.mrb[6].mxu1 }
 0x1d1   :  { %v169_v29 = vadd.f32 %v308_v24, %v168_v27  ;;  %v351_v30 = vpop.f32.mrb[7].mxu1 }
 0x1d3   :  { %v172_v31 = vpack.c.bf16 %v169_v29, %v166_v28 }
 0x1d5   :  { %369 = vmatmul.mubr.bf16.vlgmr.msra.gmra.mrb[0].mxu0 %v172_v31 }
 0x2a8   :  { %v271_v32 = vpop.f32.mrb[0].mxu0 }
 0x2a9   :  { %v370_v33 = vpop.f32.mrb[1].mxu0 }
 0x2aa   :  { %v274_v34 = vpop.f32.mrb[2].mxu0 }
 0x2ab   :  { %v325_v35 = vpack.c.bf16 %v274_v34, %v271_v32  ;;  %v371_v36 = vpop.f32.mrb[3].mxu0 }
 0x2ad   :  { %326 = vst [vmem:[#allocation6] sm:$0xff] %v325_v35  }
 0x2ae   :  { %421 = shalt.err (!%p418_p12)
}
 0x2af   :  { %s422_s15 = scalar_lea.hbm %s524_s5, 128 }
 0x2b0   :  { %p423_p13 = scmp.ne.s32.totalorder %s524_s5, %s422_s15  ;;  %p426_p0 = scmp.lt.u32.totalorder %s422_s15, %s524_s5 }
 0x2b2   :  { %p428_p1 = pnand %p426_p0, %p423_p13 }
 0x2b4   :  { %431 = shalt.err (!%p428_p1)
}
 0x2b5   :  { %299 = dma.vmem_to_hbm [thread:$0]  %s294_s12, 128, %s524_s5, [#allocation5], %s437_s28, %s437_s28, %s438_s29  }
 0x2b6   :  { %434 = dma.done.wait [#allocation5], 128  }
 0x2b7   :  { %435 = vsyncadd [#allocation5], 4294967168 }
 0x2b8   :  { %303 = vsyncpa [#allocation4], 1 }
 0x2b9   :  { %304 = vsyncpa [#allocation5], 1 }

</bundles_post_ra>
